<compile_context>
chip_gen: v7x
topology: tpu7x:2x2x1
jax: 0.10.0
libtpu: 0.0.40
codegen_flags: <defaults>
</compile_context>

<pallas_src>
import functools

import jax
import jax.numpy as jnp
import numpy as np
from jax.experimental import pallas as pl
from jax.experimental.pallas import tpu as pltpu


def _round_up(x, m):
    return ((x + m - 1) // m) * m


def _cdiv(a, b):
    return -(-a // b)


def _build_q_kernel(states_dim, actions_dim, out_pad, use_bf16,
                    x_ref, w1_ref, b1_ref, w2_ref, b2_ref, wh_ref, bh_ref,
                    masks_ref, e12_ref, smat_ref, r12_ref, out_ref):
    S, A = states_dim, actions_dim
    A2 = A * A
    f32 = jnp.float32
    mm_dt = jnp.bfloat16 if use_bf16 else f32

    x = x_ref[...]                                   # (TB, S + A)
    s = x[:, :S]                                     # (TB, S)
    a = x[:, S:S + A]                                # (TB, A)

    # trunk: relu(fc1) -> relu(fc2)
    h1 = jnp.maximum(
        jnp.dot(s.astype(mm_dt), w1_ref[...].astype(mm_dt),
                preferred_element_type=f32) + b1_ref[...], 0.0)
    h2 = jnp.maximum(
        jnp.dot(h1.astype(mm_dt), w2_ref[...].astype(mm_dt),
                preferred_element_type=f32) + b2_ref[...], 0.0)

    # fused heads: [V | mu_pre | L_flat]
    head = jnp.dot(h2.astype(mm_dt), wh_ref[...].astype(mm_dt),
                   preferred_element_type=f32) + bh_ref[...]
    v = head[:, 0:1]                                 # (TB, 1)
    mu = jnp.tanh(head[:, 1:1 + A])                  # (TB, A)
    l_flat = head[:, 1 + A:1 + A + A2]               # (TB, A*A), row-major L

    # constant masks / selection matrices: precomputed in the wrapper and
    # passed with grid-invariant index maps -> fetched once, resident across
    # grid steps (no per-step iota/cmp/cast VPU work).
    diag_f = masks_ref[0]                            # (1, A^2) diagonal mask
    low_f = masks_ref[1]                             # (1, A^2) strict-lower mask

    # L = l*lower + exp(l)*diag; exp only applied where diag==1 (overflow safe)
    l_m = l_flat * low_f + jnp.exp(l_flat * diag_f) * diag_f   # (TB, A^2)

    # P = L @ L^T via constant 0/1 selection matmuls (MXU, no lane shuffles)
    #   l_rep[c = i*A^2 + k*A + j] = L[i, j],  l_til[c] = L[k, j]
    e1 = e12_ref[0]                                  # (A^2, A^3)
    e2 = e12_ref[1]                                  # (A^2, A^3)
    l_rep = jnp.dot(l_m, e1, preferred_element_type=f32)       # (TB, A^3)
    l_til = jnp.dot(l_m, e2, preferred_element_type=f32)       # (TB, A^3)
    p_flat = jnp.dot(l_rep * l_til, smat_ref[...],
                     preferred_element_type=f32)               # (TB, A^2)

    # advantage: -0.5 * (a - mu)^T P (a - mu)
    r1 = r12_ref[0]                                  # (A, A^2), repeats d_i
    r2 = r12_ref[1]                                  # (A, A^2), tiles   d_k
    d = a - mu                                       # (TB, A)
    dd = (jnp.dot(d, r1, preferred_element_type=f32) *
          jnp.dot(d, r2, preferred_element_type=f32))          # d_i*d_k (TB, A^2)
    adv = -0.5 * jnp.sum(p_flat * dd, axis=1, keepdims=True)   # (TB, 1)
    q = adv + v

    # single lane-dense output slab: [V | mu | P_flat | A | Q | zero pad]
    out_w = 3 + A + A2
    pieces = [v, mu, p_flat, adv, q]
    if out_pad > out_w:
        pieces.append(jnp.zeros((x.shape[0], out_pad - out_w), f32))
    out_ref[...] = jnp.concatenate(pieces, axis=1)


def _build_constants(A):
    """Precompute the 0/1 selection matrices once on host (numpy)."""
    A2, A3 = A * A, A ** 3

    qv = np.arange(A2)
    diag_f = (qv // A == qv % A).astype(np.float32)[None, :]     # (1, A^2)
    low_f = (qv // A > qv % A).astype(np.float32)[None, :]       # (1, A^2)
    masks = np.stack([diag_f, low_f], axis=0)                    # (2, 1, A^2)

    p = np.arange(A2)[:, None]
    c = np.arange(A3)[None, :]
    e1 = ((p // A == c // A2) & (p % A == c % A)).astype(np.float32)
    e2 = ((c % A2) == p).astype(np.float32)
    e12 = np.stack([e1, e2], axis=0)                             # (2, A^2, A^3)

    cc = np.arange(A3)[:, None]
    rr = np.arange(A2)[None, :]
    s_mat = (rr == cc // A).astype(np.float32)                   # (A^3, A^2)

    pi = np.arange(A)[:, None]
    qi = np.arange(A2)[None, :]
    r1 = (pi == qi // A).astype(np.float32)
    r2 = (pi == qi % A).astype(np.float32)
    r12 = np.stack([r1, r2], axis=0)                             # (2, A, A^2)

    return (jnp.asarray(masks), jnp.asarray(e12),
            jnp.asarray(s_mat), jnp.asarray(r12))


def build_q_forward(params, state, action, *, actions_dim, tile_b=None,
                    use_bf16_matmul=False):
    B, S = state.shape
    A = actions_dim
    A2, A3 = A * A, A ** 3
    out_w = 3 + A + A2
    out_pad = _round_up(out_w, 128)       # lane-dense output slab (full vst)

    if tile_b is None:
        # Per-row live f32 footprint (bytes), incl. double-buffered IO blocks.
        per_row = 4 * (2 * (S + A)        # input block x2 buffers
                       + 64 + 32          # h1, h2
                       + (1 + A + A2)     # fused head
                       + 2 * A3           # l_rep, l_til
                       + 3 * A2           # l_m, p_flat, dd
                       + 2 * out_pad)     # output block x2 buffers
        const_bytes = 4 * (S * 64 + 64 + 64 * 32 + 32
                           + 33 * (1 + A + A2)
                           + 2 * A2 + 2 * A2 * A3 + A3 * A2 + 2 * A * A2)
        budget = 20 * 1024 * 1024         # headroom under the 32 MiB scoped VMEM
        cap = max(8, min(4096, ((budget - 2 * const_bytes) // per_row) // 8 * 8))
        # One step for small B; two balanced steps for larger B so both v7x
        # TensorCores get work ("parallel" grid); more only if the VMEM cap
        # (which scales with A^3) forces it.
        n_steps = 1 if B <= 256 else 2
        n_steps = max(n_steps, _cdiv(B, cap))
        tile_b = _round_up(_cdiv(B, n_steps), 8)
    B_pad = _round_up(B, tile_b)

    x = jnp.concatenate([state, action], axis=1).astype(jnp.float32)
    if B_pad != B:
        x = jnp.pad(x, ((0, B_pad - B), (0, 0)))

    # fuse V / mu / L head layers into one weight/bias slab
    w_head = jnp.concatenate([params["wv"], params["wmu"], params["wl"]], axis=1)
    b_head = jnp.concatenate([params["bv"], params["bmu"], params["bl"]], axis=1)

    masks, e12, s_mat, r12 = _build_constants(A)

    kernel = functools.partial(_build_q_kernel, S, A, out_pad, use_bf16_matmul)
    tiled = lambda i: (i, 0)       # batch-tiled
    full2 = lambda i: (0, 0)       # grid-invariant 2-D block (fetched once)
    full3 = lambda i: (0, 0, 0)    # grid-invariant 3-D block

    merged = pl.pallas_call(
        kernel,
        grid=(B_pad // tile_b,),
        in_specs=[
            pl.BlockSpec((tile_b, S + A), tiled),        # [state | action]
            pl.BlockSpec((S, 64), full2),                # fc1 weight
            pl.BlockSpec((1, 64), full2),                # fc1 bias
            pl.BlockSpec((64, 32), full2),               # fc2 weight
            pl.BlockSpec((1, 32), full2),                # fc2 bias
            pl.BlockSpec((32, 1 + A + A2), full2),       # fused head weight
            pl.BlockSpec((1, 1 + A + A2), full2),        # fused head bias
            pl.BlockSpec((2, 1, A2), full3),             # [diag | lower] masks
            pl.BlockSpec((2, A2, A3), full3),            # [e1 ; e2] selection
            pl.BlockSpec((A3, A2), full2),               # block-sum over j
            pl.BlockSpec((2, A, A2), full3),             # [r1 ; r2] repeat/tile
        ],
        out_specs=pl.BlockSpec((tile_b, out_pad), tiled),
        out_shape=jax.ShapeDtypeStruct((B_pad, out_pad), jnp.float32),
        compiler_params=pltpu.CompilerParams(
            dimension_semantics=("parallel",),
            vmem_limit_bytes=32 * 1024 * 1024),
    )(x, params["w1"], params["b1"], params["w2"], params["b2"],
      w_head, b_head, masks, e12, s_mat, r12)

    merged = merged[:B]
    v = merged[:, 0:1]
    mu = merged[:, 1:1 + A]
    p = merged[:, 1 + A:1 + A + A2].reshape(B, A, A)
    adv = merged[:, 1 + A + A2:2 + A + A2]
    q = merged[:, 2 + A + A2:3 + A + A2]
    return v, mu, p, adv, q


def init_params(key, states_dim, actions_dim):
    """Deterministic init matching the nn.Linear shapes (stored as (in, out))."""
    A = actions_dim

    def linear(k, fan_in, fan_out):
        k1, k2 = jax.random.split(k)
        bound = fan_in ** -0.5
        w = jax.random.uniform(k1, (fan_in, fan_out), jnp.float32, -bound, bound)
        b = jax.random.uniform(k2, (1, fan_out), jnp.float32, -bound, bound)
        return w, b

    keys = jax.random.split(key, 5)
    w1, b1 = linear(keys[0], states_dim, 64)
    w2, b2 = linear(keys[1], 64, 32)
    wv, bv = linear(keys[2], 32, 1)
    wmu, bmu = linear(keys[3], 32, A)
    wl, bl = linear(keys[4], 32, A * A)
    return dict(w1=w1, b1=b1, w2=w2, b2=b2, wv=wv, bv=bv,
                wmu=wmu, bmu=bmu, wl=wl, bl=bl)


def reference_forward(params, state, action, actions_dim):
    """Pure-JAX reference mirroring the PyTorch forward."""
    A = actions_dim
    h1 = jax.nn.relu(state @ params["w1"] + params["b1"])
    h2 = jax.nn.relu(h1 @ params["w2"] + params["b2"])
    v = h2 @ params["wv"] + params["bv"]
    mu = jnp.tanh(h2 @ params["wmu"] + params["bmu"])
    lf = (h2 @ params["wl"] + params["bl"]).reshape(-1, A, A)
    low = jnp.tril(jnp.ones((A, A), jnp.float32), k=-1)[None]
    diag = jnp.eye(A, dtype=jnp.float32)[None]
    L = lf * low + jnp.exp(lf) * diag
    P = jnp.einsum("bij,bkj->bik", L, L)
    d = action - mu
    adv = -0.5 * jnp.einsum("bi,bij,bj->b", d, P, d)[:, None]
    q = adv + v
    return v, mu, P, adv, q


if __name__ == "__main__":
    STATES_DIM = 32
    ACTIONS_DIM = 4
    BATCH = 16

    key = jax.random.PRNGKey(0)
    k_params, k_state, k_action = jax.random.split(key, 3)

    params = init_params(k_params, STATES_DIM, ACTIONS_DIM)
    state = jax.random.normal(k_state, (BATCH, STATES_DIM), jnp.float32)
    action = jax.random.uniform(k_action, (BATCH, ACTIONS_DIM), jnp.float32, -1.0, 1.0)

    outs = build_q_forward(params, state, action, actions_dim=ACTIONS_DIM)
    outs = jax.block_until_ready(outs)

    refs = reference_forward(params, state, action, ACTIONS_DIM)
    for got, want in zip(outs, refs):
        np.testing.assert_allclose(np.asarray(got), np.asarray(want),
                                   rtol=1e-3, atol=1e-3)

    print("KERNEL_OK")
</pallas_src>

<mosaic_0001>
module attributes {stable_mosaic.version = 11 : i64} {
  func.func @_build_q_kernel(%arg0: i32, %arg1: memref<16x36xf32, #tpu.memory_space<vmem>>, %arg2: memref<32x64xf32, #tpu.memory_space<vmem>>, %arg3: memref<1x64xf32, #tpu.memory_space<vmem>>, %arg4: memref<64x32xf32, #tpu.memory_space<vmem>>, %arg5: memref<1x32xf32, #tpu.memory_space<vmem>>, %arg6: memref<32x21xf32, #tpu.memory_space<vmem>>, %arg7: memref<1x21xf32, #tpu.memory_space<vmem>>, %arg8: memref<2x1x16xf32, #tpu.memory_space<vmem>>, %arg9: memref<2x16x64xf32, #tpu.memory_space<vmem>>, %arg10: memref<64x16xf32, #tpu.memory_space<vmem>>, %arg11: memref<2x4x16xf32, #tpu.memory_space<vmem>>, %arg12: memref<16x128xf32, #tpu.memory_space<vmem>>) attributes {dimension_semantics = [#tpu.dimension_semantics<parallel>], iteration_bounds = array<i64: 1>, scalar_prefetch = 0 : i64, scratch_operands = 0 : i64, tpu.core_type = #tpu.core_type<tc>, window_params = [{transform_indices = @transform_0, window_bounds = array<i64: 16, 36>}, {pipeline_mode = #tpu.pipeline_mode<synchronous>, transform_indices = @transform_1, window_bounds = array<i64: 32, 64>}, {pipeline_mode = #tpu.pipeline_mode<synchronous>, transform_indices = @transform_2, window_bounds = array<i64: 1, 64>}, {pipeline_mode = #tpu.pipeline_mode<synchronous>, transform_indices = @transform_3, window_bounds = array<i64: 64, 32>}, {pipeline_mode = #tpu.pipeline_mode<synchronous>, transform_indices = @transform_4, window_bounds = array<i64: 1, 32>}, {pipeline_mode = #tpu.pipeline_mode<synchronous>, transform_indices = @transform_5, window_bounds = array<i64: 32, 21>}, {pipeline_mode = #tpu.pipeline_mode<synchronous>, transform_indices = @transform_6, window_bounds = array<i64: 1, 21>}, {pipeline_mode = #tpu.pipeline_mode<synchronous>, transform_indices = @transform_7, window_bounds = array<i64: 2, 1, 16>}, {pipeline_mode = #tpu.pipeline_mode<synchronous>, transform_indices = @transform_8, window_bounds = array<i64: 2, 16, 64>}, {pipeline_mode = #tpu.pipeline_mode<synchronous>, transform_indices = @transform_9, window_bounds = array<i64: 64, 16>}, {pipeline_mode = #tpu.pipeline_mode<synchronous>, transform_indices = @transform_10, window_bounds = array<i64: 2, 4, 16>}, {transform_indices = @transform_11, window_bounds = array<i64: 16, 128>}]} {
    %c0 = arith.constant 0 : index
    %c0_0 = arith.constant 0 : index
    %0 = vector.load %arg1[%c0, %c0_0] : memref<16x36xf32, #tpu.memory_space<vmem>>, vector<16x36xf32>
    %1 = vector.extract_strided_slice %0 {offsets = [0, 0], sizes = [16, 32], strides = [1, 1]} : vector<16x36xf32> to vector<16x32xf32>
    %2 = vector.extract_strided_slice %0 {offsets = [0, 32], sizes = [16, 4], strides = [1, 1]} : vector<16x36xf32> to vector<16x4xf32>
    %c0_1 = arith.constant 0 : index
    %c0_2 = arith.constant 0 : index
    %3 = vector.load %arg2[%c0_1, %c0_2] : memref<32x64xf32, #tpu.memory_space<vmem>>, vector<32x64xf32>
    %cst = arith.constant dense<0.000000e+00> : vector<16x64xf32>
    %4 = tpu.matmul %1, %3, %cst {dimension_numbers = #tpu.dot_dimension_numbers<[1], [0], [0], [1], [0, 0, 1, 1], [], []>} : vector<16x32xf32>, vector<32x64xf32>, vector<16x64xf32> -> vector<16x64xf32>
    %c0_3 = arith.constant 0 : index
    %c0_4 = arith.constant 0 : index
    %5 = vector.load %arg3[%c0_3, %c0_4] : memref<1x64xf32, #tpu.memory_space<vmem>>, vector<1x64xf32>
    %6 = vector.broadcast %5 : vector<1x64xf32> to vector<16x64xf32>
    %7 = arith.addf %4, %6 : vector<16x64xf32>
    %cst_5 = arith.constant 0.000000e+00 : f32
    %8 = vector.broadcast %cst_5 : f32 to vector<16x64xf32>
    %9 = arith.maximumf %7, %8 : vector<16x64xf32>
    %c0_6 = arith.constant 0 : index
    %c0_7 = arith.constant 0 : index
    %10 = vector.load %arg4[%c0_6, %c0_7] : memref<64x32xf32, #tpu.memory_space<vmem>>, vector<64x32xf32>
    %cst_8 = arith.constant dense<0.000000e+00> : vector<16x32xf32>
    %11 = tpu.matmul %9, %10, %cst_8 {dimension_numbers = #tpu.dot_dimension_numbers<[1], [0], [0], [1], [0, 0, 1, 1], [], []>} : vector<16x64xf32>, vector<64x32xf32>, vector<16x32xf32> -> vector<16x32xf32>
    %c0_9 = arith.constant 0 : index
    %c0_10 = arith.constant 0 : index
    %12 = vector.load %arg5[%c0_9, %c0_10] : memref<1x32xf32, #tpu.memory_space<vmem>>, vector<1x32xf32>
    %13 = vector.broadcast %12 : vector<1x32xf32> to vector<16x32xf32>
    %14 = arith.addf %11, %13 : vector<16x32xf32>
    %cst_11 = arith.constant 0.000000e+00 : f32
    %15 = vector.broadcast %cst_11 : f32 to vector<16x32xf32>
    %16 = arith.maximumf %14, %15 : vector<16x32xf32>
    %c0_12 = arith.constant 0 : index
    %c0_13 = arith.constant 0 : index
    %17 = vector.load %arg6[%c0_12, %c0_13] : memref<32x21xf32, #tpu.memory_space<vmem>>, vector<32x21xf32>
    %cst_14 = arith.constant dense<0.000000e+00> : vector<16x21xf32>
    %18 = tpu.matmul %16, %17, %cst_14 {dimension_numbers = #tpu.dot_dimension_numbers<[1], [0], [0], [1], [0, 0, 1, 1], [], []>} : vector<16x32xf32>, vector<32x21xf32>, vector<16x21xf32> -> vector<16x21xf32>
    %c0_15 = arith.constant 0 : index
    %c0_16 = arith.constant 0 : index
    %19 = vector.load %arg7[%c0_15, %c0_16] : memref<1x21xf32, #tpu.memory_space<vmem>>, vector<1x21xf32>
    %20 = vector.broadcast %19 : vector<1x21xf32> to vector<16x21xf32>
    %21 = arith.addf %18, %20 : vector<16x21xf32>
    %22 = vector.extract_strided_slice %21 {offsets = [0, 0], sizes = [16, 1], strides = [1, 1]} : vector<16x21xf32> to vector<16x1xf32>
    %23 = vector.extract_strided_slice %21 {offsets = [0, 1], sizes = [16, 4], strides = [1, 1]} : vector<16x21xf32> to vector<16x4xf32>
    %24 = math.tanh %23 : vector<16x4xf32>
    %25 = vector.extract_strided_slice %21 {offsets = [0, 5], sizes = [16, 16], strides = [1, 1]} : vector<16x21xf32> to vector<16x16xf32>
    %c0_17 = arith.constant 0 : index
    %c0_18 = arith.constant 0 : index
    %c0_19 = arith.constant 0 : index
    %26 = vector.load %arg8[%c0_17, %c0_18, %c0_19] : memref<2x1x16xf32, #tpu.memory_space<vmem>>, vector<1x1x16xf32>
    %27 = vector.shape_cast %26 : vector<1x1x16xf32> to vector<1x16xf32>
    %c1 = arith.constant 1 : index
    %c0_20 = arith.constant 0 : index
    %c0_21 = arith.constant 0 : index
    %28 = vector.load %arg8[%c1, %c0_20, %c0_21] : memref<2x1x16xf32, #tpu.memory_space<vmem>>, vector<1x1x16xf32>
    %29 = vector.shape_cast %28 : vector<1x1x16xf32> to vector<1x16xf32>
    %30 = vector.broadcast %29 : vector<1x16xf32> to vector<16x16xf32>
    %31 = arith.mulf %25, %30 : vector<16x16xf32>
    %32 = vector.broadcast %27 : vector<1x16xf32> to vector<16x16xf32>
    %33 = arith.mulf %25, %32 : vector<16x16xf32>
    %34 = math.exp %33 : vector<16x16xf32>
    %35 = vector.broadcast %27 : vector<1x16xf32> to vector<16x16xf32>
    %36 = arith.mulf %34, %35 : vector<16x16xf32>
    %37 = arith.addf %31, %36 : vector<16x16xf32>
    %c0_22 = arith.constant 0 : index
    %c0_23 = arith.constant 0 : index
    %c0_24 = arith.constant 0 : index
    %38 = vector.load %arg9[%c0_22, %c0_23, %c0_24] : memref<2x16x64xf32, #tpu.memory_space<vmem>>, vector<1x16x64xf32>
    %39 = vector.shape_cast %38 : vector<1x16x64xf32> to vector<16x64xf32>
    %c1_25 = arith.constant 1 : index
    %c0_26 = arith.constant 0 : index
    %c0_27 = arith.constant 0 : index
    %40 = vector.load %arg9[%c1_25, %c0_26, %c0_27] : memref<2x16x64xf32, #tpu.memory_space<vmem>>, vector<1x16x64xf32>
    %41 = vector.shape_cast %40 : vector<1x16x64xf32> to vector<16x64xf32>
    %cst_28 = arith.constant dense<0.000000e+00> : vector<16x64xf32>
    %42 = tpu.matmul %37, %39, %cst_28 {dimension_numbers = #tpu.dot_dimension_numbers<[1], [0], [0], [1], [0, 0, 1, 1], [], []>} : vector<16x16xf32>, vector<16x64xf32>, vector<16x64xf32> -> vector<16x64xf32>
    %cst_29 = arith.constant dense<0.000000e+00> : vector<16x64xf32>
    %43 = tpu.matmul %37, %41, %cst_29 {dimension_numbers = #tpu.dot_dimension_numbers<[1], [0], [0], [1], [0, 0, 1, 1], [], []>} : vector<16x16xf32>, vector<16x64xf32>, vector<16x64xf32> -> vector<16x64xf32>
    %44 = arith.mulf %42, %43 : vector<16x64xf32>
    %c0_30 = arith.constant 0 : index
    %c0_31 = arith.constant 0 : index
    %45 = vector.load %arg10[%c0_30, %c0_31] : memref<64x16xf32, #tpu.memory_space<vmem>>, vector<64x16xf32>
    %cst_32 = arith.constant dense<0.000000e+00> : vector<16x16xf32>
    %46 = tpu.matmul %44, %45, %cst_32 {dimension_numbers = #tpu.dot_dimension_numbers<[1], [0], [0], [1], [0, 0, 1, 1], [], []>} : vector<16x64xf32>, vector<64x16xf32>, vector<16x16xf32> -> vector<16x16xf32>
    %c0_33 = arith.constant 0 : index
    %c0_34 = arith.constant 0 : index
    %c0_35 = arith.constant 0 : index
    %47 = vector.load %arg11[%c0_33, %c0_34, %c0_35] : memref<2x4x16xf32, #tpu.memory_space<vmem>>, vector<1x4x16xf32>
    %48 = vector.shape_cast %47 : vector<1x4x16xf32> to vector<4x16xf32>
    %c1_36 = arith.constant 1 : index
    %c0_37 = arith.constant 0 : index
    %c0_38 = arith.constant 0 : index
    %49 = vector.load %arg11[%c1_36, %c0_37, %c0_38] : memref<2x4x16xf32, #tpu.memory_space<vmem>>, vector<1x4x16xf32>
    %50 = vector.shape_cast %49 : vector<1x4x16xf32> to vector<4x16xf32>
    %51 = arith.subf %2, %24 : vector<16x4xf32>
    %cst_39 = arith.constant dense<0.000000e+00> : vector<16x16xf32>
    %52 = tpu.matmul %51, %48, %cst_39 {dimension_numbers = #tpu.dot_dimension_numbers<[1], [0], [0], [1], [0, 0, 1, 1], [], []>} : vector<16x4xf32>, vector<4x16xf32>, vector<16x16xf32> -> vector<16x16xf32>
    %cst_40 = arith.constant dense<0.000000e+00> : vector<16x16xf32>
    %53 = tpu.matmul %51, %50, %cst_40 {dimension_numbers = #tpu.dot_dimension_numbers<[1], [0], [0], [1], [0, 0, 1, 1], [], []>} : vector<16x4xf32>, vector<4x16xf32>, vector<16x16xf32> -> vector<16x16xf32>
    %54 = arith.mulf %52, %53 : vector<16x16xf32>
    %55 = arith.mulf %46, %54 : vector<16x16xf32>
    %cst_41 = arith.constant dense<0.000000e+00> : vector<16xf32>
    %56 = vector.multi_reduction <add>, %55, %cst_41 [1] : vector<16x16xf32> to vector<16xf32>
    %57 = vector.shape_cast %56 : vector<16xf32> to vector<16x1xf32>
    %cst_42 = arith.constant -5.000000e-01 : f32
    %58 = vector.broadcast %cst_42 : f32 to vector<16x1xf32>
    %59 = arith.mulf %58, %57 : vector<16x1xf32>
    %60 = arith.addf %59, %22 : vector<16x1xf32>
    %cst_43 = arith.constant 0.000000e+00 : f32
    %61 = vector.broadcast %cst_43 : f32 to vector<16x105xf32>
    %62 = tpu.concatenate %22, %24, %46, %59, %60, %61 in 1 : vector<16x1xf32>, vector<16x4xf32>, vector<16x16xf32>, vector<16x1xf32>, vector<16x1xf32>, vector<16x105xf32> -> vector<16x128xf32>
    %c0_44 = arith.constant 0 : index
    %c0_45 = arith.constant 0 : index
    %63 = vector.load %arg12[%c0_44, %c0_45] : memref<16x128xf32, #tpu.memory_space<vmem>>, vector<16x128xf32>
    tpu.vector_store %arg12[%c0_44, %c0_45], %62 {strides = array<i32>} : memref<16x128xf32, #tpu.memory_space<vmem>>, vector<16x128xf32>,
    return
  }
  func.func @transform_0(%arg0: i32) -> (i32, i32) {
    %c0_i32 = arith.constant 0 : i32
    %c0_i32_0 = arith.constant 0 : i32
    return %arg0, %c0_i32 : i32, i32
  }
  func.func @transform_1(%arg0: i32) -> (i32, i32) {
    %c0_i32 = arith.constant 0 : i32
    %c0_i32_0 = arith.constant 0 : i32
    %c0_i32_1 = arith.constant 0 : i32
    return %c0_i32, %c0_i32_0 : i32, i32
  }
  func.func @transform_2(%arg0: i32) -> (i32, i32) {
    %c0_i32 = arith.constant 0 : i32
    %c0_i32_0 = arith.constant 0 : i32
    %c0_i32_1 = arith.constant 0 : i32
    return %c0_i32, %c0_i32_0 : i32, i32
  }
  func.func @transform_3(%arg0: i32) -> (i32, i32) {
    %c0_i32 = arith.constant 0 : i32
    %c0_i32_0 = arith.constant 0 : i32
    %c0_i32_1 = arith.constant 0 : i32
    return %c0_i32, %c0_i32_0 : i32, i32
  }
  func.func @transform_4(%arg0: i32) -> (i32, i32) {
    %c0_i32 = arith.constant 0 : i32
    %c0_i32_0 = arith.constant 0 : i32
    %c0_i32_1 = arith.constant 0 : i32
    return %c0_i32, %c0_i32_0 : i32, i32
  }
  func.func @transform_5(%arg0: i32) -> (i32, i32) {
    %c0_i32 = arith.constant 0 : i32
    %c0_i32_0 = arith.constant 0 : i32
    %c0_i32_1 = arith.constant 0 : i32
    return %c0_i32, %c0_i32_0 : i32, i32
  }
  func.func @transform_6(%arg0: i32) -> (i32, i32) {
    %c0_i32 = arith.constant 0 : i32
    %c0_i32_0 = arith.constant 0 : i32
    %c0_i32_1 = arith.constant 0 : i32
    return %c0_i32, %c0_i32_0 : i32, i32
  }
  func.func @transform_7(%arg0: i32) -> (i32, i32, i32) {
    %c0_i32 = arith.constant 0 : i32
    %c0_i32_0 = arith.constant 0 : i32
    %c0_i32_1 = arith.constant 0 : i32
    %c0_i32_2 = arith.constant 0 : i32
    return %c0_i32, %c0_i32_0, %c0_i32_1 : i32, i32, i32
  }
  func.func @transform_8(%arg0: i32) -> (i32, i32, i32) {
    %c0_i32 = arith.constant 0 : i32
    %c0_i32_0 = arith.constant 0 : i32
    %c0_i32_1 = arith.constant 0 : i32
    %c0_i32_2 = arith.constant 0 : i32
    return %c0_i32, %c0_i32_0, %c0_i32_1 : i32, i32, i32
  }
  func.func @transform_9(%arg0: i32) -> (i32, i32) {
    %c0_i32 = arith.constant 0 : i32
    %c0_i32_0 = arith.constant 0 : i32
    %c0_i32_1 = arith.constant 0 : i32
    return %c0_i32, %c0_i32_0 : i32, i32
  }
  func.func @transform_10(%arg0: i32) -> (i32, i32, i32) {
    %c0_i32 = arith.constant 0 : i32
    %c0_i32_0 = arith.constant 0 : i32
    %c0_i32_1 = arith.constant 0 : i32
    %c0_i32_2 = arith.constant 0 : i32
    return %c0_i32, %c0_i32_0, %c0_i32_1 : i32, i32, i32
  }
  func.func @transform_11(%arg0: i32) -> (i32, i32) {
    %c0_i32 = arith.constant 0 : i32
    %c0_i32_0 = arith.constant 0 : i32
    return %arg0, %c0_i32 : i32, i32
  }
}

</mosaic_0001>

<bundles_post_ra>
// kernel: tpu_custom_call.1
= control target key start
LH: loop header
LB: loop body
LE: loop exit
PB: predicated region body
PF: predicated region fallthrough
CT: control target
= control target key end

     0   :  { %vm52_vm0 = vcmask 261120   ;;  %s1357_s0 = inlined_call_operand.vmem [shape: f32[16,36], index: 0, kind: input, shape index: {}]   ;;  %s1358_s1 = inlined_call_operand.vmem [shape: f32[32,64], index: 1, kind: input, shape index: {}]   ;;  %s1359_s2 = inlined_call_operand.vmem [shape: f32[1,64], index: 2, kind: input, shape index: {}]   ;;  %s1360_s3 = inlined_call_operand.vmem [shape: f32[64,32], index: 3, kind: input, shape index: {}]   ;;  %s1361_s4 = inlined_call_operand.vmem [shape: f32[1,32], index: 4, kind: input, shape index: {}]   ;;  %s1362_s5 = inlined_call_operand.vmem [shape: f32[32,21], index: 5, kind: input, shape index: {}]   ;;  %s1363_s6 = inlined_call_operand.vmem [shape: f32[1,21], index: 6, kind: input, shape index: {}]   ;;  %s1364_s7 = inlined_call_operand.vmem [shape: f32[2,1,16], index: 7, kind: input, shape index: {}]   ;;  %s1365_s8 = inlined_call_operand.vmem [shape: f32[2,16,64], index: 8, kind: input, shape index: {}]   ;;  %s1366_s9 = inlined_call_operand.vmem [shape: f32[64,16], index: 9, kind: input, shape index: {}]   ;;  %s1367_s10 = inlined_call_operand.vmem [shape: f32[2,4,16], index: 10, kind: input, shape index: {}]   ;;  %s1368_s11 = inlined_call_operand.hbm [shape: f32[16,128], index: 11, kind: output, shape index: {}]  }
   0x1   :  { %v41_v0 = vld [vmem:[%s1358_s1] sm:$0xff]  ;;  %v42_v1 = vld [vmem:[%s1358_s1 + $0x8] sm:$0xff]  ;;  %v43_v2 = vld [vmem:[%s1358_s1 + $0x10] sm:$0xff] }
   0x2   :  { %v1018_v3 = vpack.c.bf16 %v42_v1, %v41_v0  ;;  %v44_v4 = vld [vmem:[%s1358_s1 + $0x18] sm:$0xff]  ;;  %v1197_v5 = vld [vmem:[%s1357_s0] sm:$0xff]  ;;  %v137_v8 = vld [vmem:[%s1360_s3 + $0x8] sm:$0xff] }
   0x3   :  { %v1022_v6 = vpack.c.bf16 %v44_v4, %v43_v2  ;;  %942 = vmatprep.mubr.msk.f32.mxu0 %vm52_vm0, %v1197_v5  ;;  %v136_v7 = vld [vmem:[%s1360_s3] sm:$0xff]  ;;  %v138_v9 = vld [vmem:[%s1360_s3 + $0x10] sm:$0xff]  ;;  %v139_v11 = vld [vmem:[%s1360_s3 + $0x18] sm:$0xff] }
   0x4   :  { %1019 = vmatprep.subr.bf16.mxu0 %v1018_v3  ;;  %v1026_v10 = vpack.c.bf16 %v137_v8, %v136_v7  ;;  %v1030_v12 = vpack.c.bf16 %v139_v11, %v138_v9  ;;  %v140_v13 = vld [vmem:[%s1360_s3 + $0x20] sm:$0xff]  ;;  %v141_v14 = vld [vmem:[%s1360_s3 + $0x28] sm:$0xff] }
   0x5   :  { %1021 = vmatpush3.bf16.msra.mxu0 %v1018_v3 }
   0x6   :  { %16 = vsyncpa [#allocation3], 0  ;;  %1023 = vmatprep.subr.bf16.mxu0 %v1022_v6  ;;  %1027 = vmatprep.subr.bf16.mxu1 %v1026_v10  ;;  %v1034_v15 = vpack.c.bf16 %v141_v14, %v140_v13  ;;  %v1222_v16 = vld [vmem:[%s1357_s0 + $0x8] sm:$0xff]  ;;  %v142_v17 = vld [vmem:[%s1360_s3 + $0x30] sm:$0xff]  ;;  %vm151_vm1 = vcmask 523264   ;;  %s1114_s14 = smov 5  }
   0x7   :  { %1029 = vmatpush3.bf16.msra.mxu1 %v1026_v10  ;;  %v143_v18 = vld [vmem:[%s1360_s3 + $0x38] sm:$0xff]  ;;  %v235_v20 = vld [vmem:[%s1362_s5] sm:$0xff]  ;;  %v236_v21 = vld [vmem:[%s1362_s5 + $0x8] sm:$0xff]  ;;  %s1115_s25 = smov 31   ;;  %s1117_s0 = smov 96   ;;  %vm371_vm2 = vcmask 130048  }
   0x8   :  { %1031 = vmatprep.subr.bf16.mxu1 %v1030_v12  ;;  %v1038_v19 = vpack.c.bf16 %v143_v18, %v142_v17  ;;  %v1042_v22 = vpack.c.bf16 %v236_v21, %v235_v20  ;;  %v861_v23 = vld [vmem:[%s1359_s2] ss:$0 sm:$0xff]  ;;  %v237_v30 = vld [vmem:[%s1362_s5 + $0x10] sm:$0xff]  ;;  %v238_v31 = vld [vmem:[%s1362_s5 + $0x18] sm:$0xff]  ;;  %vm641_vm3 = vcmask 1043456   ;;  %vm636_vm4 = vcmask 31744  }
   0x9   :  { %1025 = vmatpush3.bf16.msra.mxu0 %v1022_v6  ;;  %v1046_v32 = vpack.c.bf16 %v238_v31, %v237_v30  ;;  %v872_v33 = vld [vmem:[%s1364_s7] ss:$0 sm:$0xff]  ;;  %v871_v34 = vld [vmem:[%s1364_s7 + $0x1] ss:$0 sm:$0xff]  ;;  %v361_v51 = vld [vmem:[%s1365_s8 + $0x8] sm:$0xff]  ;;  %vm828_vm5 = vcmask 7168  }
   0xa   :  { %1043 = vmatprep.subr.bf16.mxu0 %v1042_v22  ;;  %347 = vrot.lane.b32.xlu0 %v872_v33, %s1114_s14  ;;  %v864_v35 = vld [vmem:[%s1361_s4] ss:$0 sm:$0xff]  ;;  %v873_v55 = vld [vmem:[%s1365_s8 + $0x10] sm:$0xff]  ;;  %v874_v56 = vld [vmem:[%s1365_s8 + $0x18] sm:$0xff]  ;;  %vm831_vm6 = vcmask 39936   ;;  %vm834_vm7 = vcmask 171008  }
   0xb   :  { %1033 = vmatpush3.bf16.msra.mxu1 %v1030_v12  ;;  %v867_v42 = vld [vmem:[%s1363_s6] ss:$0 sm:$0xff]  ;;  %v1054_v57 = vpack.c.bf16 %v874_v56, %v873_v55  ;;  %v529_v10 = vld [vmem:[%s1366_s9 + $0x8] sm:$0xff]  ;;  %v530_v11 = vld [vmem:[%s1366_s9 + $0x10] sm:$0xff]  ;;  %vm837_vm8 = vcmask 179200   ;;  %vm840_vm9 = vcmask 187392  }
   0xc   :  { %943 = vmatmul.mubr.msk.f32.vlgmr.msra.gmra.mrb[0].mxu0 %vm52_vm0, %v1222_v16  ;;  %1035 = vmatprep.subr.bf16.mxu1 %v1034_v15  ;;  %v360_v50 = vld [vmem:[%s1365_s8] sm:$0xff]  ;;  %s1116_s8 = smov 123   ;;  %v533_v21 = vld [vmem:[%s1366_s9 + $0x28] sm:$0xff] }
   0xd   :  { %1045 = vmatpush3.bf16.msra.mxu0 %v1042_v22  ;;  %v1050_v53 = vpack.c.bf16 %v361_v51, %v360_v50  ;;  %v528_v9 = vld [vmem:[%s1366_s9] sm:$0xff] }
   0xe   :  { %1047 = vmatprep.subr.bf16.mxu0 %v1046_v32  ;;  %337 = vrot.lane.b32.xlu0 %v871_v34, %s1114_s14  ;;  %v1058_v12 = vpack.c.bf16 %v529_v10, %v528_v9  ;;  %v617_v14 = vld [vmem:[%s1367_s10] sm:$0xf]  ;;  %v881_v18 = vld [vmem:[%s1367_s10 + $0x4] sm:$0xf] }
   0xf   :  { %1037 = vmatpush3.bf16.msra.mxu1 %v1034_v15  ;;  %v532_v20 = vld [vmem:[%s1366_s9 + $0x20] sm:$0xff] }
  0x10   :  { %1039 = vmatprep.subr.bf16.mxu1 %v1038_v19  ;;  %v1066_v22 = vpack.c.bf16 %v533_v21, %v532_v20 }
  0x11   :  { %1049 = vmatpush3.bf16.msra.mxu0 %v1046_v32 }
  0x12   :  { %1059 = vmatprep.subr.bf16.mxu0 %v1058_v12 }
  0x13   :  { %1041 = vmatpush3.bf16.msra.mxu1 %v1038_v19 }
  0x14   :  { %1051 = vmatprep.subr.bf16.mxu1 %v1050_v53 }
  0x7c   :  { %v348_v46 = vpop.permute.xlu0 %347 }
  0x80   :  { %v338_v59 = vpop.permute.xlu0 %337 }
  0xdf   :  { %v944_v24 = vpop.f32.mrb[0].mxu0 }
  0xe0   :  { %v131_v25 = vadd.f32 %v944_v24, %v861_v23  ;;  %v125_v26 = vpop.f32.mrb[1].mxu0 }
  0xe1   :  { %v126_v27 = vadd.f32 %v861_v23, %v125_v26  ;;  %v535_v23 = vld [vmem:[%s1366_s9 + $0x38] sm:$0xff] }
  0xe2   :  { %v135_v29 = vmax.f32 %v131_v25, 0.0 }
  0xe3   :  { %v134_v28 = vmax.f32 %v126_v27, 0.0 }
  0xe5   :  { %961 = vmatprep.mubr.msk.f32.mxu1 %vm151_vm1, %v134_v28 }
  0xe6   :  { %962 = vmatmul.mubr.msk.f32.vlgmr.msra.gmra.mrb[0].mxu1 %vm151_vm1, %v135_v29 }
  0xe7   :  { %1053 = vmatpush3.bf16.msra.mxu1 %v1050_v53 }
  0xe8   :  { %1055 = vmatprep.subr.bf16.mxu1 %v1054_v57 }
 0x1b9   :  { %v963_v36 = vpop.f32.mrb[0].mxu1 }
 0x1ba   :  { %v230_v37 = vadd.f32 %v963_v36, %v864_v35  ;;  %v224_v38 = vpop.f32.mrb[1].mxu1 }
 0x1bb   :  { %v225_v39 = vadd.f32 %v864_v35, %v224_v38 }
 0x1bc   :  { %v234_v41 = vmax.f32 %v230_v37, 0.0 }
 0x1bd   :  { %v233_v40 = vmax.f32 %v225_v39, 0.0 }
 0x1bf   :  { %972 = vmatprep.mubr.msk.f32.mxu0 %vm52_vm0, %v233_v40 }
 0x1c0   :  { %973 = vmatmul.mubr.msk.f32.vlgmr.msra.gmra.mrb[2].mxu0 %vm52_vm0, %v234_v41 }
 0x1c1   :  { %1061 = vmatpush3.bf16.msra.mxu0 %v1058_v12 }
 0x293   :  { %v974_v43 = vpop.f32.mrb[2].mxu0 }
 0x294   :  { %v1265_v44 = vadd.f32 %v974_v43, %v867_v42  ;;  %v318_v45 = vpop.f32.mrb[3].mxu0 }
 0x295   :  { %v1267_v47 = vadd.f32 %v867_v42, %v318_v45 }
 0x296   :  { %v351_v48 = vmul.f32 %v348_v46, %v1265_v44  ;;  %v341_v2 = vmul.f32 %v338_v59, %v1265_v44 }
 0x297   :  { %1082 = vtanh.f32 %v1267_v47  ;;  %v350_v49 = vmul.f32 %v348_v46, %v1267_v47  ;;  %v340_v62 = vmul.f32 %v338_v59, %v1267_v47 }
 0x298   :  { %v354_v52 = vmul.f32 1.442695, %v351_v48 }
 0x299   :  { %v352_v54 = vmul.f32 1.442695, %v350_v49 }
 0x29a   :  { %1084 = vpow2.f32 %v354_v52 }
 0x29b   :  { %1086 = vpow2.f32 %v352_v54 }
 0x29c   :  { %1088 = vtanh.f32 %v1265_v44 }
 0x2a1   :  { %v1284_v58 = vpop.eup %1082 }
 0x2a2   :  { %622 = vrot.lane.b32.xlu0 %v1284_v58, %s1115_s25 }
 0x2a4   :  { %v1085_v60 = vpop.eup %1084 }
 0x2a5   :  { %v1087_v61 = vpop.eup %1086  ;;  %v357_v0 = vmul.f32 %v1085_v60, %v348_v46 }
 0x2a6   :  { %v356_v63 = vmul.f32 %v1087_v61, %v348_v46  ;;  %v1290_v4 = vpop.eup %1088 }
 0x2a7   :  { %v359_v3 = vadd.f32 %v357_v0, %v341_v2  ;;  %v830_v53 = vsel %vm828_vm5, %v1265_v44, %v1290_v4 }
 0x2a8   :  { %v358_v1 = vadd.f32 %v356_v63, %v340_v62 }
 0x2aa   :  { %367 = vrot.lane.b32.xlu1 %v358_v1, %s1116_s8 }
 0x2ae   :  { %369 = vrot.lane.b32.xlu1 %v359_v3, %s1116_s8 }
 0x2b2   :  { %624 = vrot.lane.b32.xlu1 %v1290_v4, %s1115_s25 }
 0x314   :  { %v623_v6 = vpop.permute.xlu0 %622 }
 0x315   :  { %v628_v7 = vsub.f32 %v1197_v5, %v623_v6  ;;  %v531_v5 = vld [vmem:[%s1366_s9 + $0x18] sm:$0xff] }
 0x316   :  { %v1062_v15 = vpack.c.bf16 %v531_v5, %v530_v11 }
 0x317   :  { %632 = vrot.lane.b32.xlu0 %v628_v7, %s1117_s0 }
 0x318   :  { %1063 = vmatprep.subr.bf16.mxu0 %v1062_v15 }
 0x319   :  { %1065 = vmatpush3.bf16.msra.mxu0 %v1062_v15 }
 0x31a   :  { %1067 = vmatprep.subr.bf16.mxu0 %v1066_v22 }
 0x31c   :  { %v368_v8 = vpop.permute.xlu1 %367 }
 0x31d   :  { %979 = vmatprep.mubr.msk.f32.mxu1 %vm371_vm2, %v368_v8  ;;  %1069 = vmatpush3.bf16.msra.mxu0 %v1066_v22 }
 0x320   :  { %v370_v13 = vpop.permute.xlu1 %369 }
 0x321   :  { %980 = vmatmul.mubr.msk.f32.vlgmr.msra.gmra.mrb[2].mxu1 %vm371_vm2, %v370_v13 }
 0x322   :  { %1057 = vmatpush3.bf16.msra.mxu1 %v1054_v57  ;;  %986 = vmatprep.mubr.msk.f32.mxu1 %vm371_vm2, %v368_v8  ;;  %v829_v57 = vsel %vm828_vm5, %v1267_v47, %v1284_v58 }
 0x323   :  { %1008 = vmatprep.subr.msk.mxu1 %vm641_vm3, %v617_v14 }
 0x324   :  { %v625_v17 = vpop.permute.xlu1 %624 }
 0x325   :  { %v629_v19 = vsub.f32 %v1222_v16, %v625_v17  ;;  %987 = vmatmul.mubr.msk.f32.vlgmr.msra.gmra.mrb[4].mxu1 %vm371_vm2, %v370_v13  ;;  %v534_v16 = vld [vmem:[%s1366_s9 + $0x30] sm:$0xff]  ;;  %s1118_s9 = smov 22  }
 0x326   :  { %1009 = vmatpush3.msk.msra.mxu1 %vm641_vm3, %v617_v14  ;;  %v1070_v24 = vpack.c.bf16 %v535_v23, %v534_v16 }
 0x327   :  { %634 = vrot.lane.b32.xlu1 %v629_v19, %s1117_s0  ;;  %1013 = vmatprep.subr.msk.mxu1 %vm641_vm3, %v881_v18 }
 0x328   :  { %1071 = vmatprep.subr.bf16.mxu0 %v1070_v24 }
 0x329   :  { %1073 = vmatpush3.bf16.msra.mxu0 %v1070_v24 }
 0x389   :  { %v633_v25 = vpop.permute.xlu0 %632 }
 0x38a   :  { %1010 = vmatprep.mubr.msk.f32.mxu1 %vm636_vm4, %v633_v25 }
 0x399   :  { %v635_v26 = vpop.permute.xlu1 %634 }
 0x39a   :  { %1011 = vmatmul.mubr.msk.f32.vlgmr.msra.gmra.mrb[6].mxu1 %vm636_vm4, %v635_v26 }
 0x39b   :  { %1015 = vmatprep.mubr.msk.f32.mxu1 %vm636_vm4, %v633_v25  ;;  %1014 = vmatpush3.msk.msra.mxu1 %vm641_vm3, %v881_v18 }
 0x39e   :  { %1016 = vmatmul.mubr.msk.f32.vlgmr.msra.gmra.mrb[8].mxu1 %vm636_vm4, %v635_v26 }
 0x3f4   :  { %v981_v27 = vpop.f32.mrb[2].mxu1 }
 0x3f5   :  { %v442_v28 = vpop.f32.mrb[3].mxu1 }
 0x3f8   :  { %v988_v29 = vpop.f32.mrb[4].mxu1 }
 0x3f9   :  { %v527_v30 = vmul.f32 %v988_v29, %v981_v27  ;;  %v517_v31 = vpop.f32.mrb[5].mxu1 }
 0x3fa   :  { %v526_v32 = vmul.f32 %v517_v31, %v442_v28 }
 0x3fc   :  { %1005 = vmatprep.mubr.msk.f32.mxu0 %vm151_vm1, %v526_v32 }
 0x3fd   :  { %1006 = vmatmul.mubr.msk.f32.vlgmr.msra.gmra.mrb[4].mxu0 %vm151_vm1, %v527_v30 }
 0x46d   :  { %v1012_v33 = vpop.f32.mrb[6].mxu1 }
 0x46e   :  { %v711_v34 = vpop.f32.mrb[7].mxu1 }
 0x471   :  { %v1017_v35 = vpop.f32.mrb[8].mxu1 }
 0x472   :  { %v799_v36 = vmul.f32 %v1017_v35, %v1012_v33  ;;  %v789_v37 = vpop.f32.mrb[9].mxu1 }
 0x473   :  { %v798_v38 = vmul.f32 %v789_v37, %v711_v34 }
 0x4d0   :  { %v1007_v39 = vpop.f32.mrb[4].mxu0 }
 0x4d1   :  { %v801_v40 = vmul.f32 %v1007_v39, %v799_v36  ;;  %v608_v41 = vpop.f32.mrb[5].mxu0 }
 0x4d2   :  { %v800_v42 = vmul.f32 %v798_v38, %v608_v41 }
 0x4d3   :  { %v805_v43 = vsel %vm371_vm2, %v801_v40, 0.0 }
 0x4d4   :  { %806 = vadd.xlane.f32.xlu1 %v805_v43  ;;  %v802_v45 = vsel %vm371_vm2, %v800_v42, 0.0 }
 0x4d5   :  { %803 = vadd.xlane.f32.xlu0 %v802_v45 }
 0x4e5   :  { %816 = vrot.lane.b32.xlu1 %v1007_v39, %s1114_s14 }
 0x4eb   :  { %814 = vrot.lane.b32.xlu0 %v608_v41, %s1114_s14  ;;  %s1119_s14 = smov [#allocation2]  }
 0x4ec   :  { %s850_s21 = sshll.u32 %s1119_s14, 4  ;;  %s851_s21 = int_to_ptr.vmem [resolvable:$true] %s850_s21 }
 0x4ed   :  { %s1090_s6 = scalar_lea.vmem %s851_s21, 256  ;;  %p1095_p1 = scmp.lt.s32.totalorder %s851_s21, %s851_s21 }
 0x4ee   :  { %p1091_p0 = scmp.ne.s32.totalorder %s851_s21, %s1090_s6  ;;  %p1096_p2 = scmp.lt.s32.totalorder %s1090_s6, %s1090_s6 }
 0x4f0   :  { %p1097_p3 = por %p1096_p2, %p1095_p1 }
 0x4f2   :  { %p1098_p4 = pnand %p1097_p3, %p1091_p0 }
 0x561   :  { %v807_v46 = vpop.xlane.xlu1 %806 }
 0x562   :  { %v809_v48 = vmul.f32 -0.5, %v807_v46  ;;  %v804_v49 = vpop.xlane.xlu0 %803 }
 0x563   :  { %v808_v50 = vmul.f32 -0.5, %v804_v49 }
 0x564   :  { %v811_v51 = vadd.f32 %v809_v48, %v1265_v44 }
 0x565   :  { %v810_v52 = vadd.f32 %v808_v50, %v1267_v47  ;;  %v817_v54 = vpop.permute.xlu1 %816 }
 0x566   :  { %v833_v55 = vsel %vm831_vm6, %v830_v53, %v817_v54  ;;  %824 = vrot.lane.b32.xlu1 %v811_v51, %s1118_s9  ;;  %v815_v56 = vpop.permute.xlu0 %814 }
 0x567   :  { %v832_v59 = vsel %vm831_vm6, %v829_v57, %v815_v56  ;;  %822 = vrot.lane.b32.xlu0 %v810_v52, %s1118_s9  ;;  %v836_v60 = vsel %vm834_vm7, %v833_v55, %v809_v48 }
 0x568   :  { %v835_v61 = vsel %vm834_vm7, %v832_v59, %v808_v50 }
 0x5d8   :  { %v825_v62 = vpop.permute.xlu1 %824 }
 0x5d9   :  { %v839_v63 = vsel %vm837_vm8, %v836_v60, %v825_v62  ;;  %v823_v0 = vpop.permute.xlu0 %822 }
 0x5da   :  { %v842_v44 = vsel %vm840_vm9, %v839_v63, 0.0  ;;  %v838_v1 = vsel %vm837_vm8, %v835_v61, %v823_v0 }
 0x5db   :  { %844 = vst [vmem:[#allocation2 + $0x8] sm:$0xff] %v842_v44  ;;  %v841_v2 = vsel %vm840_vm9, %v838_v1, 0.0 }
 0x5dc   :  { %843 = vst [vmem:[#allocation2] sm:$0xff] %v841_v2 }
 0x5dd   :  { %1101 = shalt.err (!%p1098_p4)
}
 0x5de   :  { %s1102_s24 = scalar_lea.hbm %s1368_s11, 256 }
 0x5df   :  { %p1103_p5 = scmp.ne.s32.totalorder %s1368_s11, %s1102_s24  ;;  %p1106_p6 = scmp.lt.u32.totalorder %s1102_s24, %s1368_s11 }
 0x5e1   :  { %p1108_p7 = pnand %p1106_p6, %p1103_p5 }
 0x5e3   :  { %1111 = shalt.err (!%p1108_p7)
}
 0x5e4   :  { %s1120_s27 = smov 128   ;;  %s1121_s28 = smov 8  }
 0x5e5   :  { %856 = dma.vmem_to_hbm [thread:$0]  %s851_s21, 256, %s1368_s11, [#allocation3], %s1120_s27, %s1120_s27, %s1121_s28  }
 0x5e6   :  { %1112 = dma.done.wait [#allocation3], 256  }
 0x5e7   :  { %1113 = vsyncadd [#allocation3], 4294967040 }
 0x5e8   :  { %860 = vsyncpa [#allocation3], 1 }

</bundles_post_ra>
